<compile_context>
chip_gen: v7x
topology: tpu7x:2x2x1
jax: 0.10.0
libtpu: 0.0.40
codegen_flags: <defaults>
</compile_context>

<pallas_src>
import functools

import jax
import jax.numpy as jnp
from jax import lax
from jax.experimental import pallas as pl
from jax.experimental.pallas import tpu as pltpu


def _attention_kernel(
    feat_ref,    # (TB, Lp, E)  features tile (L padded to mult of 8), compute dtype
    hid_ref,     # (TB, D)      hidden states, compute dtype
    we_ref,      # (E, A)       encoder_projection.weight^T, compute dtype
    wd_ref,      # (D, A)       decoder_projection.weight^T, compute dtype
    bc_ref,      # (1, A)       fused bias (b_enc + b_dec), f32
    ws_ref,      # (1, 1, A)    attention_score_layer.weight as a lane row, f32
    alpha_ref,   # (TB, Lp)     output: attention distribution (pad lanes = 0)
    ctx_ref,     # (TB, E)      output: weighted feature sum
    *,
    num_regions,  # static: original (unpadded) L
):
    TB, Lp, E = feat_ref.shape
    A = we_ref.shape[1]

    feat = feat_ref[...]                                     # (TB, Lp, E)

    # encoder_projection(features): one flattened matmul, M = TB*Lp rows.
    # Lp % 8 == 0 so this reshape is a pure view (no VMEM repack).
    enc = jnp.dot(feat.reshape(TB * Lp, E), we_ref[...],
                  preferred_element_type=jnp.float32)        # (TB*Lp, A) f32

    # decoder_projection(hidden) + fused (b_enc + b_dec) bias.
    dec = (jnp.dot(hid_ref[...], wd_ref[...],
                   preferred_element_type=jnp.float32)
           + bc_ref[...])                                    # (TB, A) f32

    # tanh(enc + dec.unsqueeze(1)) broadcast over the L regions (f32 on VPU/EUP).
    combined = jnp.tanh(enc.reshape(TB, Lp, A) + dec[:, None, :])   # (TB, Lp, A)

    # attention_score_layer(combined).squeeze(2): VPU multiply + lane reduce
    # over A instead of an N=1 MXU matmul.  Score bias dropped: softmax is
    # shift-invariant, so it cannot change alpha or context.
    scores = jnp.sum(combined * ws_ref[...], axis=-1)        # (TB, Lp) f32

    if Lp != num_regions:
        lane = lax.broadcasted_iota(jnp.int32, (TB, Lp), 1)
        scores = jnp.where(lane < num_regions, scores, -jnp.inf)

    # softmax over L (lane axis; batch rows on sublanes -> lane-dense stores).
    m = jnp.max(scores, axis=-1, keepdims=True)              # (TB, 1)
    e = jnp.exp(scores - m)                                  # (TB, Lp)
    s = jnp.sum(e, axis=-1, keepdims=True)                   # (TB, 1)
    alpha = e * pl.reciprocal(s, approx=True)                # EUP recip

    # context = (features * alpha.unsqueeze(2)).sum(dim=1); f32 accumulation.
    ctx = jnp.sum(feat.astype(jnp.float32) * alpha[:, :, None], axis=1)  # (TB, E)

    alpha_ref[...] = alpha.astype(alpha_ref.dtype)
    ctx_ref[...] = ctx.astype(ctx_ref.dtype)


def attention_forward(features, hidden_state, params, *,
                      compute_dtype=jnp.bfloat16,
                      batch_tile=None,
                      vmem_budget_bytes=None):
    """features: (B, L, E) f32; hidden_state: (B, D) f32.

    params = (W_enc^T (E,A), W_dec^T (D,A), b_enc+b_dec (1,A), W_score (1,1,A)).
    """
    B, L, E = features.shape
    D = hidden_state.shape[1]
    we_t, wd_t, b_comb, ws_row = params
    A = we_t.shape[1]

    # Pad the region axis to a multiple of 8 so in-kernel reshapes are views.
    Lp = -(-L // 8) * 8
    if Lp != L:
        features = jnp.pad(features, ((0, 0), (0, Lp - L), (0, 0)))

    feat_in = features.astype(compute_dtype)
    hid_in = hidden_state.astype(compute_dtype)
    we_in = we_t.astype(compute_dtype)
    wd_in = wd_t.astype(compute_dtype)
    b_comb = b_comb.astype(jnp.float32)
    ws_row = ws_row.astype(jnp.float32)

    itemsize = jnp.dtype(compute_dtype).itemsize

    # --- VMEM-aware batch-tile selection ------------------------------------
    if vmem_budget_bytes is None:
        try:
            phys = pltpu.get_tpu_info().vmem_capacity_bytes
        except Exception:
            phys = 64 * 2 ** 20          # v7x floor; safe everywhere
        vmem_budget_bytes = int(phys * 0.7)

    # Per-step VMEM: everything is double-buffered by the BlockSpec pipeline.
    fixed = 2 * ((E + D) * A * itemsize + 2 * A * 4)            # weights/biases
    per_row = 2 * (Lp * E * itemsize                            # features
                   + D * itemsize                               # hidden
                   + (Lp + E) * 4)                              # alpha + ctx (f32)

    def fits(tb):
        return fixed + tb * per_row <= vmem_budget_bytes

    if batch_tile is None:
        divisors = [d for d in range(1, B + 1) if B % d == 0 and fits(d)]
        if not divisors:
            # TODO(synk): for very large L*E (doesn't fit even at tb=1) add a
            # second grid axis tiling E with a (tb*Lp, A) f32 accumulator
            # instead of failing; not needed for typical captioning shapes.
            divisors = [1]
        tb = None
        # Prefer sublane-aligned tiles leaving >=4 (then >=2) grid steps so the
        # pipeline overlaps DMA/compute and v7x shards across both TensorCores.
        for min_steps in (4, 2):
            cand = [d for d in divisors if d % 8 == 0 and B // d >= min_steps]
            if cand:
                tb = max(cand)
                break
        if tb is None:
            tb = max(divisors)
    else:
        tb = min(batch_tile, B)
        while B % tb != 0:
            tb -= 1

    grid = (B // tb,)
    vmem_limit = int(min(max(vmem_budget_bytes, 32 * 2 ** 20), 120 * 2 ** 20))

    # --- cost hint for the XLA scheduler -------------------------------------
    flops = 2 * B * Lp * E * A + 2 * B * D * A + 2 * B * Lp * A + 2 * B * Lp * E
    bytes_accessed = ((B * Lp * E + B * D + E * A + D * A) * itemsize
                      + (B * Lp + B * E + 3 * A) * 4)
    transcendentals = B * Lp * A + B * Lp
    cost = pl.CostEstimate(flops=int(flops),
                           transcendentals=int(transcendentals),
                           bytes_accessed=int(bytes_accessed))

    kernel = functools.partial(_attention_kernel, num_regions=L)

    alpha_p, ctx = pl.pallas_call(
        kernel,
        out_shape=(
            jax.ShapeDtypeStruct((B, Lp), jnp.float32),
            jax.ShapeDtypeStruct((B, E), jnp.float32),
        ),
        grid_spec=pltpu.PrefetchScalarGridSpec(
            num_scalar_prefetch=0,
            grid=grid,
            in_specs=[
                pl.BlockSpec((tb, Lp, E), lambda b: (b, 0, 0)),   # features
                pl.BlockSpec((tb, D), lambda b: (b, 0)),          # hidden
                pl.BlockSpec((E, A), lambda b: (0, 0)),           # W_enc^T
                pl.BlockSpec((D, A), lambda b: (0, 0)),           # W_dec^T
                pl.BlockSpec((1, A), lambda b: (0, 0)),           # b_enc + b_dec
                pl.BlockSpec((1, 1, A), lambda b: (0, 0, 0)),     # W_score row
            ],
            out_specs=[
                pl.BlockSpec((tb, Lp), lambda b: (b, 0)),         # alpha
                pl.BlockSpec((tb, E), lambda b: (b, 0)),          # context
            ],
        ),
        compiler_params=pltpu.CompilerParams(
            dimension_semantics=("parallel",),      # shard batch tiles on v7x
            vmem_limit_bytes=vmem_limit,
        ),
        cost_estimate=cost,
    )(feat_in, hid_in, we_in, wd_in, b_comb, ws_row)

    alpha = alpha_p[:, :L] if Lp != L else alpha_p
    return alpha, ctx


def init_params(key, encoder_dim, decoder_dim, attention_dim):
    """Deterministic nn.Linear-style init (uniform +-1/sqrt(fan_in)); raw layout."""
    ks = jax.random.split(key, 6)

    def lin(kw, kb, fan_in, fan_out):
        bound = 1.0 / jnp.sqrt(fan_in)
        w = jax.random.uniform(kw, (fan_out, fan_in), jnp.float32, -bound, bound)
        b = jax.random.uniform(kb, (fan_out,), jnp.float32, -bound, bound)
        return w, b

    w_enc, b_enc = lin(ks[0], ks[1], encoder_dim, attention_dim)
    w_dec, b_dec = lin(ks[2], ks[3], decoder_dim, attention_dim)
    w_sc, b_sc = lin(ks[4], ks[5], attention_dim, 1)
    return (w_enc, b_enc, w_dec, b_dec, w_sc, b_sc)


def prepare_params(raw_params):
    """Convert raw nn.Linear params to the kernel layout.

    Score bias is dropped (softmax is shift-invariant -> identical outputs);
    encoder/decoder biases are fused into one (1, A) vector."""
    w_enc, b_enc, w_dec, b_dec, w_sc, _b_sc = raw_params
    return (
        w_enc.T,                         # (E, A)
        w_dec.T,                         # (D, A)
        (b_enc + b_dec).reshape(1, -1),  # (1, A)
        w_sc.reshape(1, 1, -1),          # (1, 1, A)
    )


def reference_forward(features, hidden_state, raw_params):
    """Pure-JAX reference matching the PyTorch forward exactly (incl. score bias)."""
    w_enc, b_enc, w_dec, b_dec, w_sc, b_sc = raw_params
    enc = features @ w_enc.T + b_enc                         # (B, L, A)
    dec = hidden_state @ w_dec.T + b_dec                     # (B, A)
    combined = jnp.tanh(enc + dec[:, None, :])               # (B, L, A)
    scores = (combined @ w_sc.T)[..., 0] + b_sc[0]           # (B, L)
    alpha = jax.nn.softmax(scores, axis=1)                   # (B, L)
    ctx = jnp.sum(features * alpha[:, :, None], axis=1)      # (B, E)
    return alpha, ctx


if __name__ == "__main__":
    B, L = 2, 8
    encoder_dim, decoder_dim, attention_dim = 32, 32, 32

    key = jax.random.PRNGKey(0)
    k_feat, k_hid, k_par = jax.random.split(key, 3)

    features = jax.random.normal(k_feat, (B, L, encoder_dim), jnp.float32)
    hidden_state = jax.random.normal(k_hid, (B, decoder_dim), jnp.float32)
    raw_params = init_params(k_par, encoder_dim, decoder_dim, attention_dim)
    params = prepare_params(raw_params)

    alpha_ref, ctx_ref = reference_forward(features, hidden_state, raw_params)

    # f32 compute path: tight check (only approx-reciprocal error, ~2^-12 rel).
    alpha32, ctx32 = attention_forward(features, hidden_state, params,
                                       compute_dtype=jnp.float32)
    alpha32 = jax.block_until_ready(alpha32)
    ctx32 = jax.block_until_ready(ctx32)
    assert jnp.allclose(alpha32, alpha_ref, atol=1e-3, rtol=1e-3)
    assert jnp.allclose(ctx32, ctx_ref, atol=1e-3, rtol=1e-3)

    # Default bf16 HBM/MXU path (f32 accumulation): loose check vs f32 reference.
    alpha16, ctx16 = attention_forward(features, hidden_state, params)
    alpha16 = jax.block_until_ready(alpha16)
    ctx16 = jax.block_until_ready(ctx16)
    assert jnp.allclose(alpha16, alpha_ref, atol=3e-2, rtol=3e-2)
    assert jnp.allclose(ctx16, ctx_ref, atol=3e-2, rtol=3e-2)

    print("KERNEL_OK")
</pallas_src>

<mosaic_0001>
module attributes {stable_mosaic.version = 11 : i64} {
  func.func @_attention_kernel(%arg0: i32, %arg1: memref<2x8x32xf32, #tpu.memory_space<vmem>>, %arg2: memref<2x32xf32, #tpu.memory_space<vmem>>, %arg3: memref<32x32xf32, #tpu.memory_space<vmem>>, %arg4: memref<32x32xf32, #tpu.memory_space<vmem>>, %arg5: memref<1x32xf32, #tpu.memory_space<vmem>>, %arg6: memref<1x1x32xf32, #tpu.memory_space<vmem>>, %arg7: memref<2x8xf32, #tpu.memory_space<vmem>>, %arg8: memref<2x32xf32, #tpu.memory_space<vmem>>) attributes {dimension_semantics = [#tpu.dimension_semantics<parallel>], iteration_bounds = array<i64: 1>, scalar_prefetch = 0 : i64, scratch_operands = 0 : i64, tpu.core_type = #tpu.core_type<tc>, window_params = [{transform_indices = @transform_0, window_bounds = array<i64: 2, 8, 32>}, {transform_indices = @transform_1, window_bounds = array<i64: 2, 32>}, {pipeline_mode = #tpu.pipeline_mode<synchronous>, transform_indices = @transform_2, window_bounds = array<i64: 32, 32>}, {pipeline_mode = #tpu.pipeline_mode<synchronous>, transform_indices = @transform_3, window_bounds = array<i64: 32, 32>}, {pipeline_mode = #tpu.pipeline_mode<synchronous>, transform_indices = @transform_4, window_bounds = array<i64: 1, 32>}, {pipeline_mode = #tpu.pipeline_mode<synchronous>, transform_indices = @transform_5, window_bounds = array<i64: 1, 1, 32>}, {transform_indices = @transform_6, window_bounds = array<i64: 2, 8>}, {transform_indices = @transform_7, window_bounds = array<i64: 2, 32>}]} {
    %c0 = arith.constant 0 : index
    %c0_0 = arith.constant 0 : index
    %c0_1 = arith.constant 0 : index
    %0 = vector.load %arg1[%c0, %c0_0, %c0_1] : memref<2x8x32xf32, #tpu.memory_space<vmem>>, vector<2x8x32xf32>
    %1 = vector.shape_cast %0 : vector<2x8x32xf32> to vector<16x32xf32>
    %c0_2 = arith.constant 0 : index
    %c0_3 = arith.constant 0 : index
    %2 = vector.load %arg3[%c0_2, %c0_3] : memref<32x32xf32, #tpu.memory_space<vmem>>, vector<32x32xf32>
    %cst = arith.constant dense<0.000000e+00> : vector<16x32xf32>
    %3 = tpu.matmul %1, %2, %cst {dimension_numbers = #tpu.dot_dimension_numbers<[1], [0], [0], [1], [0, 0, 1, 1], [], []>} : vector<16x32xf32>, vector<32x32xf32>, vector<16x32xf32> -> vector<16x32xf32>
    %c0_4 = arith.constant 0 : index
    %c0_5 = arith.constant 0 : index
    %4 = vector.load %arg2[%c0_4, %c0_5] : memref<2x32xf32, #tpu.memory_space<vmem>>, vector<2x32xf32>
    %c0_6 = arith.constant 0 : index
    %c0_7 = arith.constant 0 : index
    %5 = vector.load %arg4[%c0_6, %c0_7] : memref<32x32xf32, #tpu.memory_space<vmem>>, vector<32x32xf32>
    %cst_8 = arith.constant dense<0.000000e+00> : vector<2x32xf32>
    %6 = tpu.matmul %4, %5, %cst_8 {dimension_numbers = #tpu.dot_dimension_numbers<[1], [0], [0], [1], [0, 0, 1, 1], [], []>} : vector<2x32xf32>, vector<32x32xf32>, vector<2x32xf32> -> vector<2x32xf32>
    %c0_9 = arith.constant 0 : index
    %c0_10 = arith.constant 0 : index
    %7 = vector.load %arg5[%c0_9, %c0_10] : memref<1x32xf32, #tpu.memory_space<vmem>>, vector<1x32xf32>
    %8 = vector.broadcast %7 : vector<1x32xf32> to vector<2x32xf32>
    %9 = arith.addf %6, %8 : vector<2x32xf32>
    %10 = vector.shape_cast %3 : vector<16x32xf32> to vector<2x8x32xf32>
    %11 = vector.shape_cast %9 : vector<2x32xf32> to vector<2x1x32xf32>
    %12 = vector.broadcast %11 : vector<2x1x32xf32> to vector<2x8x32xf32>
    %13 = arith.addf %10, %12 : vector<2x8x32xf32>
    %14 = math.tanh %13 : vector<2x8x32xf32>
    %c0_11 = arith.constant 0 : index
    %c0_12 = arith.constant 0 : index
    %c0_13 = arith.constant 0 : index
    %15 = vector.load %arg6[%c0_11, %c0_12, %c0_13] : memref<1x1x32xf32, #tpu.memory_space<vmem>>, vector<1x1x32xf32>
    %16 = vector.broadcast %15 : vector<1x1x32xf32> to vector<2x8x32xf32>
    %17 = arith.mulf %14, %16 : vector<2x8x32xf32>
    %cst_14 = arith.constant dense<0.000000e+00> : vector<2x8xf32>
    %18 = vector.multi_reduction <add>, %17, %cst_14 [2] : vector<2x8x32xf32> to vector<2x8xf32>
    %cst_15 = arith.constant dense<0xFF800000> : vector<2xf32>
    %19 = vector.multi_reduction <maximumf>, %18, %cst_15 [1] : vector<2x8xf32> to vector<2xf32>
    %20 = vector.shape_cast %19 : vector<2xf32> to vector<2x1xf32>
    %21 = vector.broadcast %20 : vector<2x1xf32> to vector<2x8xf32>
    %22 = arith.subf %18, %21 : vector<2x8xf32>
    %23 = math.exp %22 : vector<2x8xf32>
    %cst_16 = arith.constant dense<0.000000e+00> : vector<2xf32>
    %24 = vector.multi_reduction <add>, %23, %cst_16 [1] : vector<2x8xf32> to vector<2xf32>
    %25 = vector.shape_cast %24 : vector<2xf32> to vector<2x1xf32>
    %26 = tpu.reciprocal %25 {approx = true} : vector<2x1xf32> -> vector<2x1xf32>
    %27 = vector.broadcast %26 : vector<2x1xf32> to vector<2x8xf32>
    %28 = arith.mulf %23, %27 : vector<2x8xf32>
    %29 = vector.shape_cast %28 : vector<2x8xf32> to vector<2x8x1xf32>
    %30 = vector.broadcast %29 : vector<2x8x1xf32> to vector<2x8x32xf32>
    %31 = arith.mulf %0, %30 : vector<2x8x32xf32>
    %cst_17 = arith.constant dense<0.000000e+00> : vector<2x32xf32>
    %32 = vector.multi_reduction <add>, %31, %cst_17 [1] : vector<2x8x32xf32> to vector<2x32xf32>
    %c0_18 = arith.constant 0 : index
    %c0_19 = arith.constant 0 : index
    %33 = vector.load %arg7[%c0_18, %c0_19] : memref<2x8xf32, #tpu.memory_space<vmem>>, vector<2x8xf32>
    tpu.vector_store %arg7[%c0_18, %c0_19], %28 {strides = array<i32>} : memref<2x8xf32, #tpu.memory_space<vmem>>, vector<2x8xf32>,
    %c0_20 = arith.constant 0 : index
    %c0_21 = arith.constant 0 : index
    %34 = vector.load %arg8[%c0_20, %c0_21] : memref<2x32xf32, #tpu.memory_space<vmem>>, vector<2x32xf32>
    tpu.vector_store %arg8[%c0_20, %c0_21], %32 {strides = array<i32>} : memref<2x32xf32, #tpu.memory_space<vmem>>, vector<2x32xf32>,
    return
  }
  func.func @transform_0(%arg0: i32) -> (i32, i32, i32) {
    %c0_i32 = arith.constant 0 : i32
    %c0_i32_0 = arith.constant 0 : i32
    %c0_i32_1 = arith.constant 0 : i32
    return %arg0, %c0_i32, %c0_i32_0 : i32, i32, i32
  }
  func.func @transform_1(%arg0: i32) -> (i32, i32) {
    %c0_i32 = arith.constant 0 : i32
    %c0_i32_0 = arith.constant 0 : i32
    return %arg0, %c0_i32 : i32, i32
  }
  func.func @transform_2(%arg0: i32) -> (i32, i32) {
    %c0_i32 = arith.constant 0 : i32
    %c0_i32_0 = arith.constant 0 : i32
    %c0_i32_1 = arith.constant 0 : i32
    return %c0_i32, %c0_i32_0 : i32, i32
  }
  func.func @transform_3(%arg0: i32) -> (i32, i32) {
    %c0_i32 = arith.constant 0 : i32
    %c0_i32_0 = arith.constant 0 : i32
    %c0_i32_1 = arith.constant 0 : i32
    return %c0_i32, %c0_i32_0 : i32, i32
  }
  func.func @transform_4(%arg0: i32) -> (i32, i32) {
    %c0_i32 = arith.constant 0 : i32
    %c0_i32_0 = arith.constant 0 : i32
    %c0_i32_1 = arith.constant 0 : i32
    return %c0_i32, %c0_i32_0 : i32, i32
  }
  func.func @transform_5(%arg0: i32) -> (i32, i32, i32) {
    %c0_i32 = arith.constant 0 : i32
    %c0_i32_0 = arith.constant 0 : i32
    %c0_i32_1 = arith.constant 0 : i32
    %c0_i32_2 = arith.constant 0 : i32
    return %c0_i32, %c0_i32_0, %c0_i32_1 : i32, i32, i32
  }
  func.func @transform_6(%arg0: i32) -> (i32, i32) {
    %c0_i32 = arith.constant 0 : i32
    %c0_i32_0 = arith.constant 0 : i32
    return %arg0, %c0_i32 : i32, i32
  }
  func.func @transform_7(%arg0: i32) -> (i32, i32) {
    %c0_i32 = arith.constant 0 : i32
    %c0_i32_0 = arith.constant 0 : i32
    return %arg0, %c0_i32 : i32, i32
  }
}

</mosaic_0001>

<bundles_post_ra>
// kernel: tpu_custom_call.1
= control target key start
LH: loop header
LB: loop body
LE: loop exit
PB: predicated region body
PF: predicated region fallthrough
CT: control target
= control target key end

     0   :  { %13 = vsyncpa [#allocation3], 0  ;;  %s796_s0 = inlined_call_operand.hbm [shape: f32[2,8,32], index: 0, kind: input, shape index: {}]   ;;  %s797_s1 = inlined_call_operand.vmem [shape: f32[2,32], index: 1, kind: input, shape index: {}]   ;;  %s798_s2 = inlined_call_operand.hbm [shape: f32[32,32], index: 2, kind: input, shape index: {}]   ;;  %s799_s3 = inlined_call_operand.hbm [shape: f32[32,32], index: 3, kind: input, shape index: {}]   ;;  %s800_s4 = inlined_call_operand.vmem [shape: f32[1,32], index: 4, kind: input, shape index: {}]   ;;  %s801_s5 = inlined_call_operand.vmem [shape: f32[1,1,32], index: 5, kind: input, shape index: {}]   ;;  %s802_s6 = inlined_call_operand.hbm [shape: f32[2,8], index: 6, kind: output, shape index: {0}]   ;;  %s803_s7 = inlined_call_operand.hbm [shape: f32[2,32], index: 7, kind: output, shape index: {1}]  }
   0x1   :  { %14 = vsyncpa [#allocation6], 0 }
   0x2   :  { %15 = vsyncpa [#allocation4], 0 }
   0x3   :  { %16 = vsyncpa [#allocation10], 0  ;;  %s631_s24 = smov [#allocation5]   ;;  %s632_s26 = smov [#allocation2]  }
   0x4   :  { %s36_s25 = sshll.u32 %s631_s24, 4  ;;  %s22_s27 = sshll.u32 %s632_s26, 4  ;;  %s37_s25 = int_to_ptr.vmem [resolvable:$true] %s36_s25  ;;  %s683_s27 = int_to_ptr.vmem [resolvable:$true] %s22_s27 }
   0x5   :  { %s513_s30 = scalar_lea.hbm %s798_s2, 512 }
   0x6   :  { %p514_p0 = scmp.ne.s32.totalorder %s798_s2, %s513_s30  ;;  %p517_p1 = scmp.lt.u32.totalorder %s513_s30, %s798_s2 }
   0x8   :  { %p519_p2 = pnand %p517_p1, %p514_p0 }
   0xa   :  { %522 = shalt.err (!%p519_p2)
}
   0xb   :  { %s523_s12 = scalar_lea.vmem %s37_s25, 512  ;;  %p528_p4 = scmp.lt.s32.totalorder %s37_s25, %s37_s25 }
   0xc   :  { %p524_p3 = scmp.ne.s32.totalorder %s37_s25, %s523_s12  ;;  %p529_p5 = scmp.lt.s32.totalorder %s523_s12, %s523_s12 }
   0xe   :  { %p530_p6 = por %p529_p5, %p528_p4 }
  0x10   :  { %p531_p7 = pnand %p530_p6, %p524_p3 }
  0x12   :  { %534 = shalt.err (!%p531_p7)
}
  0x13   :  { %s633_s13 = smov 128   ;;  %s634_s14 = smov 8  }
  0x14   :  { %42 = dma.hbm_to_vmem [thread:$0]  %s798_s2, 512, %s37_s25, [#allocation6], %s633_s13, %s633_s13, %s634_s14  }
  0x15   :  { %s535_s19 = scalar_lea.hbm %s796_s0, 256 }
  0x16   :  { %p536_p8 = scmp.ne.s32.totalorder %s796_s0, %s535_s19  ;;  %p539_p9 = scmp.lt.u32.totalorder %s535_s19, %s796_s0 }
  0x18   :  { %p541_p10 = pnand %p539_p9, %p536_p8 }
  0x1a   :  { %544 = shalt.err (!%p541_p10)
}
  0x1b   :  { %s545_s24 = scalar_lea.vmem %s683_s27, 256  ;;  %p550_p12 = scmp.lt.s32.totalorder %s683_s27, %s683_s27 }
  0x1c   :  { %p546_p11 = scmp.ne.s32.totalorder %s683_s27, %s545_s24  ;;  %p551_p13 = scmp.lt.s32.totalorder %s545_s24, %s545_s24 }
  0x1e   :  { %p552_p0 = por %p551_p13, %p550_p12 }
  0x20   :  { %p553_p1 = pnand %p552_p0, %p546_p11 }
  0x22   :  { %556 = shalt.err (!%p553_p1)
}
  0x23   :  { %28 = dma.hbm_to_vmem [thread:$0]  %s796_s0, 256, %s683_s27, [#allocation3], %s633_s13, %s633_s13, %s634_s14  }
  0x24   :  { %s635_s26 = smov [#allocation7]   ;;  %s557_s8 = scalar_lea.hbm %s799_s3, 512 }
  0x25   :  { %s48_s28 = sshll.u32 %s635_s26, 4  ;;  %p558_p2 = scmp.ne.s32.totalorder %s799_s3, %s557_s8  ;;  %s49_s28 = int_to_ptr.vmem [resolvable:$true] %s48_s28 }
  0x26   :  { %p561_p3 = scmp.lt.u32.totalorder %s557_s8, %s799_s3 }
  0x28   :  { %p563_p4 = pnand %p561_p3, %p558_p2 }
  0x2a   :  { %566 = shalt.err (!%p563_p4)
}
  0x2b   :  { %s567_s15 = scalar_lea.vmem %s49_s28, 512  ;;  %p572_p6 = scmp.lt.s32.totalorder %s49_s28, %s49_s28 }
  0x2c   :  { %p568_p5 = scmp.ne.s32.totalorder %s49_s28, %s567_s15  ;;  %p573_p7 = scmp.lt.s32.totalorder %s567_s15, %s567_s15 }
  0x2e   :  { %p574_p8 = por %p573_p7, %p572_p6 }
  0x30   :  { %p575_p9 = pnand %p574_p8, %p568_p5 }
  0x32   :  { %578 = shalt.err (!%p575_p9)
}
  0x33   :  { %54 = dma.hbm_to_vmem [thread:$0]  %s799_s3, 512, %s49_s28, [#allocation6], %s633_s13, %s633_s13, %s634_s14  }
  0x34   :  { %623 = dma.done.wait [#allocation3], 256  }
  0x35   :  { %624 = vsyncadd [#allocation3], 4294967040 }
  0x36   :  { %625 = dma.done.wait [#allocation6], 1024  }
  0x37   :  { %626 = vsyncadd [#allocation6], 4294966272  ;;  %v636_v0 = vmov 0.0|0.0   ;;  %vm637_vm0 = vmmov 0   ;;  %v638_v1 = vmov 0.0   ;;  %v157_v2 = vld [vmem:[#allocation7] sm:$0xff]  ;;  %v245_v19 = vlaneseq }
  0x38   :  { %483 = vmatprep.subr.bf16.mxu1 %v636_v0  ;;  %472 = vmatprep.mubr.msk.f32.mxu1 %vm637_vm0, %v638_v1  ;;  %v158_v3 = vld [vmem:[#allocation7 + $0x8] sm:$0xff]  ;;  %v159_v4 = vld [vmem:[#allocation7 + $0x10] sm:$0xff]  ;;  %v160_v6 = vld [vmem:[#allocation7 + $0x18] sm:$0xff]  ;;  %vm74_vm1 = vcmask 261120   ;;  %v639_v17 = vmov 1966171168  }
  0x39   :  { %v484_v5 = vpack.c.bf16 %v158_v3, %v157_v2  ;;  %v70_v7 = vld [vmem:[#allocation5] sm:$0xff]  ;;  %v71_v8 = vld [vmem:[#allocation5 + $0x8] sm:$0xff]  ;;  %v72_v10 = vld [vmem:[#allocation5 + $0x10] sm:$0xff]  ;;  %v487_v12 = vpack.c.bf16 %v160_v6, %v159_v4  ;;  %v243_v18 = vunpack.c.l.s4 %v639_v17  ;;  %v747_v21 = vshrl.u32 %v245_v19, 7 }
  0x3a   :  { %v475_v9 = vpack.c.bf16 %v71_v8, %v70_v7  ;;  %v73_v11 = vld [vmem:[#allocation5 + $0x18] sm:$0xff]  ;;  %v735_v14 = vld [vmem:[#allocation2] sm:$0xff]  ;;  %v296_v45 = vand.u32 127, %v245_v19  ;;  %vm305_vm2 = vcmask 1041409   ;;  %vm308_vm3 = vcmask 58368  }
  0x3b   :  { %485 = vmatpush3.bf16.msra.mxu1 %v484_v5  ;;  %v479_v13 = vpack.c.bf16 %v73_v11, %v72_v10  ;;  %461 = vmatprep.mubr.msk.f32.mxu0 %vm74_vm1, %v735_v14  ;;  %v156_v15 = vld [vmem:[%s797_s1] sm:$0x3]  ;;  %v742_v16 = vld [vmem:[#allocation2 + $0x8] sm:$0xff]  ;;  %v244_v20 = vunpack.c.0.s8 %v243_v18  ;;  %v266_v29 = vsub.s32 0, %v747_v21  ;;  %v640_v53 = vmov 0  }
  0x3c   :  { %486 = vmatprep.subr.bf16.mxu1 %v636_v0  ;;  %476 = vmatprep.subr.bf16.mxu0 %v475_v9  ;;  %v439_v22 = vld [vmem:[%s800_s4] ss:$0 sm:$0xff]  ;;  %v299_v47 = vsub.s32 %v296_v45, %v747_v21  ;;  %v319_v54 = vsub.s32 1, %v747_v21 }
  0x3d   :  { %478 = vmatpush3.bf16.msra.mxu0 %v475_v9  ;;  %v247_v23 = vsub.s32 %v244_v20, %v747_v21  ;;  %v441_v38 = vld [vmem:[%s801_s5] ss:$0 sm:$0xff]  ;;  %502 = vset.pattern.permute.xlu0 %v640_v53  ;;  %s641_s5 = smov [#allocation8]  }
  0x3e   :  { %480 = vmatprep.subr.bf16.mxu0 %v479_v13  ;;  %501 = vset.pattern.permute.xlu1 %v640_v53  ;;  %s413_s17 = sshll.u32 %s641_s5, 4  ;;  %s414_s17 = int_to_ptr.vmem [resolvable:$true] %s413_s17 }
  0x3f   :  { %488 = vmatpush3.bf16.msra.mxu1 %v487_v12  ;;  %s579_s18 = scalar_lea.vmem %s414_s17, 32  ;;  %p584_p11 = scmp.lt.s32.totalorder %s414_s17, %s414_s17 }
  0x40   :  { %p580_p10 = scmp.ne.s32.totalorder %s414_s17, %s579_s18  ;;  %p585_p12 = scmp.lt.s32.totalorder %s579_s18, %s579_s18 }
  0x41   :  { %482 = vmatpush3.bf16.msra.mxu0 %v479_v13 }
  0x42   :  { %473 = vmatmul.mubr.msk.f32.vlgmr.msra.gmra.mrb[0].mxu1 %vm74_vm1, %v156_v15  ;;  %p586_p13 = por %p585_p12, %p584_p11 }
  0x44   :  { %462 = vmatmul.mubr.msk.f32.vlgmr.msra.gmra.mrb[0].mxu0 %vm74_vm1, %v742_v16  ;;  %p587_p0 = pnand %p586_p13, %p580_p10 }
 0x115   :  { %v237_v24 = vpop.f32.mrb[0].mxu1 }
 0x116   :  { %v238_v25 = vadd.f32 %v439_v22, %v237_v24  ;;  %v474_v26 = vpop.f32.mrb[1].mxu1 }
 0x117   :  { %v463_v27 = vpop.f32.mrb[0].mxu0 }
 0x118   :  { %v248_v28 = vrot.slane %v238_v25, %v247_v23  ;;  %v147_v30 = vpop.f32.mrb[1].mxu0 }
 0x11a   :  { %v249_v31 = vcombine.high %v248_v28, %v248_v28  ;;  %v256_v32 = vrot.slane %v248_v28, %v247_v23 }
 0x11c   :  { %v263_v33 = vrot.slane %v249_v31, %v247_v23  ;;  %v267_v34 = vrot.slane %v256_v32, %v266_v29 }
 0x11e   :  { %v271_v35 = vrot.slane %v263_v33, %v266_v29  ;;  %v274_v36 = vadd.f32 %v267_v34, %v147_v30 }
 0x120   :  { %v275_v37 = vadd.f32 %v463_v27, %v271_v35  ;;  %503 = vtanh.f32 %v274_v36 }
 0x122   :  { %505 = vtanh.f32 %v275_v37 }
 0x12a   :  { %v504_v39 = vpop.eup %503 }
 0x12b   :  { %v285_v40 = vmul.f32 %v504_v39, %v441_v38 }
 0x12c   :  { %v506_v41 = vpop.eup %505 }
 0x12d   :  { %v287_v42 = vsel %vm74_vm1, %v285_v40, 0.0  ;;  %v286_v43 = vmul.f32 %v506_v41, %v441_v38 }
 0x12e   :  { %288 = vadd.xlane.f32.xlu0 %v287_v42 }
 0x12f   :  { %v290_v44 = vsel %vm74_vm1, %v286_v43, 0.0 }
 0x132   :  { %291 = vadd.xlane.f32.xlu0 %v290_v44 }
 0x1bb   :  { %v289_v46 = vpop.xlane.xlu0 %288 }
 0x1bc   :  { %v300_v49 = vrot.slane %v289_v46, %v299_v47 }
 0x1bf   :  { %v292_v48 = vpop.xlane.xlu0 %291 }
 0x1c0   :  { %v304_v50 = vrot.slane %v292_v48, %v299_v47 }
 0x1c2   :  { %v306_v51 = vsel %vm305_vm2, %v304_v50, %v300_v49 }
 0x1c3   :  { %v309_v52 = vsel %vm308_vm3, %v306_v51, -inf }
 0x1c4   :  { %310 = vmax.xlane.f32.xlu1 %v309_v52 }
 0x251   :  { %v311_v55 = vpop.xlane.xlu1 %310 }
 0x252   :  { %v316_v56 = vrot.slane %v311_v55, %v266_v29  ;;  %v320_v57 = vrot.slane %v311_v55, %v319_v54 }
 0x254   :  { %v323_v58 = vsub.f32 %v289_v46, %v316_v56  ;;  %v324_v59 = vsub.f32 %v292_v48, %v320_v57 }
 0x256   :  { %v325_v60 = vmul.f32 1.442695, %v323_v58  ;;  %v327_v61 = vmul.f32 1.442695, %v324_v59 }
 0x258   :  { %507 = vpow2.f32 %v325_v60 }
 0x259   :  { %509 = vpow2.f32 %v327_v61 }
 0x262   :  { %v508_v62 = vpop.eup %507 }
 0x263   :  { %v510_v63 = vpop.eup %509  ;;  %332 = vperm.xlu1 %501, %v508_v62  }
 0x264   :  { %335 = vperm.xlu0 %502, %v510_v63  }
 0x2e2   :  { %v333_v0 = vpop.permute.xlu1 %332 }
 0x2e3   :  { %v336_v1 = vpop.permute.xlu0 %335  ;;  %v340_v2 = vrot.slane %v333_v0, %v299_v47 }
 0x2e4   :  { %v344_v3 = vrot.slane %v336_v1, %v299_v47 }
 0x2e6   :  { %v345_v4 = vsel %vm305_vm2, %v344_v3, %v340_v2 }
 0x2e7   :  { %v347_v5 = vsel %vm308_vm3, %v345_v4, 0.0 }
 0x2e8   :  { %348 = vadd.xlane.f32.xlu1 %v347_v5 }
 0x375   :  { %v349_v6 = vpop.xlane.xlu1 %348 }
 0x376   :  { %511 = vrcp.f32 %v349_v6 }
 0x380   :  { %v512_v7 = vpop.eup %511 }
 0x381   :  { %v355_v8 = vrot.slane %v512_v7, %v266_v29  ;;  %v359_v10 = vrot.slane %v512_v7, %v319_v54 }
 0x383   :  { %v362_v9 = vmul.f32 %v508_v62, %v355_v8  ;;  %v363_v11 = vmul.f32 %v510_v63, %v359_v10 }
 0x385   :  { %366 = vperm.xlu0 %502, %v362_v9  }
 0x389   :  { %371 = vperm.xlu0 %502, %v363_v11  }
 0x404   :  { %v367_v12 = vpop.permute.xlu0 %366 }
 0x405   :  { %v374_v13 = vmul.f32 %v367_v12, %v735_v14  ;;  %v393_v19 = vrot.slane %v367_v12, %v299_v47 }
 0x407   :  { %v376_v15 = vsel %vm74_vm1, %v374_v13, 0.0 }
 0x408   :  { %v377_v17 = vrot.slane %v376_v15, 4  ;;  %v372_v18 = vpop.permute.xlu0 %371 }
 0x409   :  { %v375_v20 = vmul.f32 %v372_v18, %v742_v16  ;;  %v397_v21 = vrot.slane %v372_v18, %v299_v47 }
 0x40a   :  { %v378_v22 = vadd.f32 %v377_v17, %v376_v15 }
 0x40b   :  { %v383_v23 = vsel %vm74_vm1, %v375_v20, 0.0  ;;  %v398_v24 = vsel %vm305_vm2, %v397_v21, %v393_v19 }
 0x40c   :  { %v379_v25 = vrot.slane %v378_v22, 2  ;;  %v384_v26 = vrot.slane %v383_v23, 4  ;;  %400 = vst.msk [vmem:[#allocation8] sm:$0x3] %vm308_vm3, %v398_v24 }
 0x40d   :  { %590 = shalt.err (!%p587_p0)
}
 0x40e   :  { %s591_s21 = scalar_lea.hbm %s802_s6, 32 }
 0x40f   :  { %p592_p1 = scmp.ne.s32.totalorder %s802_s6, %s591_s21  ;;  %p595_p2 = scmp.lt.u32.totalorder %s591_s21, %s802_s6 }
 0x411   :  { %p597_p3 = pnand %p595_p2, %p592_p1 }
 0x413   :  { %600 = shalt.err (!%p597_p3)
}
 0x414   :  { %416 = dma.vmem_to_hbm [thread:$0]  %s414_s17, 32, %s802_s6, [#allocation4]   ;;  %v380_v14 = vadd.f32 %v379_v25, %v378_v22  ;;  %v385_v16 = vadd.f32 %v384_v26, %v383_v23  ;;  %vm405_vm4 = vcmask 254976  }
 0x415   :  { %s642_s28 = smov [#allocation9]  }
 0x416   :  { %v386_v27 = vrot.slane %v385_v16, 2  ;;  %v381_v28 = vrot.slane %v380_v14, 1  ;;  %s423_s29 = sshll.u32 %s642_s28, 4  ;;  %s424_s29 = int_to_ptr.vmem [resolvable:$true] %s423_s29 }
 0x417   :  { %s601_s30 = scalar_lea.vmem %s424_s29, 32  ;;  %p606_p5 = scmp.lt.s32.totalorder %s424_s29, %s424_s29 }
 0x418   :  { %v387_v29 = vadd.f32 %v386_v27, %v385_v16  ;;  %v382_v32 = vadd.f32 %v381_v28, %v380_v14  ;;  %p602_p4 = scmp.ne.s32.totalorder %s424_s29, %s601_s30  ;;  %p607_p6 = scmp.lt.s32.totalorder %s601_s30, %s601_s30 }
 0x41a   :  { %v388_v30 = vrot.slane %v387_v29, 1  ;;  %p608_p7 = por %p607_p6, %p606_p5 }
 0x41c   :  { %v389_v31 = vadd.f32 %v388_v30, %v387_v29  ;;  %p609_p8 = pnand %p608_p7, %p602_p4 }
 0x41e   :  { %v403_v33 = vsel %vm305_vm2, %v389_v31, %v382_v32 }
 0x41f   :  { %406 = vst.msk [vmem:[#allocation9] sm:$0x3] %vm405_vm4, %v403_v33 }
 0x420   :  { %612 = shalt.err (!%p609_p8)
}
 0x421   :  { %s613_s9 = scalar_lea.hbm %s803_s7, 32 }
 0x422   :  { %p614_p9 = scmp.ne.s32.totalorder %s803_s7, %s613_s9  ;;  %p617_p10 = scmp.lt.u32.totalorder %s613_s9, %s803_s7 }
 0x424   :  { %p619_p11 = pnand %p617_p10, %p614_p9 }
 0x426   :  { %622 = shalt.err (!%p619_p11)
}
 0x427   :  { %426 = dma.vmem_to_hbm [thread:$0]  %s424_s29, 32, %s803_s7, [#allocation10]  }
 0x428   :  { %627 = dma.done.wait [#allocation4], 32  }
 0x429   :  { %628 = vsyncadd [#allocation4], 4294967264 }
 0x42a   :  { %629 = dma.done.wait [#allocation10], 32  }
 0x42b   :  { %630 = vsyncadd [#allocation10], 4294967264 }
 0x42c   :  { %433 = vsyncpa [#allocation3], 1 }
 0x42d   :  { %434 = vsyncpa [#allocation6], 1 }
 0x42e   :  { %435 = vsyncpa [#allocation4], 1 }
 0x42f   :  { %436 = vsyncpa [#allocation10], 1 }

</bundles_post_ra>
